<compile_context>
chip_gen: v7x
topology: tpu7x:2x2x1
jax: 0.10.0
libtpu: 0.0.40
codegen_flags: <defaults>
</compile_context>

<pallas_src>
import jax
import jax.numpy as jnp
from jax.experimental import pallas as pl
from jax.experimental.pallas import tpu as pltpu

_TP_MAX = 8192  # pixels per grid step (multiple of 128); ~0.3 MB VMEM traffic/step


def _fused_kernel(x_ref, wb_ref, o_ref):
    """x_ref: (Cin, TP) VMEM; wb_ref: (C2, 2*Cin+2) = [w1 | w12 | b1 | b12]; o_ref: (C2, TP)."""
    cin = x_ref.shape[0]

    v1 = wb_ref[:, 2 * cin:2 * cin + 1]          # (C2, 1)  conv1 bias
    v2 = wb_ref[:, 2 * cin + 1:2 * cin + 2]      # (C2, 1)  fused conv2(conv1) bias

    for c in range(cin):                         # Cin == 3, fully unrolled
        xc = x_ref[c:c + 1, :]                   # (1, TP); sublane-broadcast in the mul
        v1 = v1 + wb_ref[:, c:c + 1] * xc            # (C2,1)*(1,TP) -> (C2,TP)  (VPU)
        v2 = v2 + wb_ref[:, cin + c:cin + c + 1] * xc

    # max(v2, max(v1, v2)) == max(v1, v2); then relu.
    o_ref[...] = jnp.maximum(jnp.maximum(v1, v2), 0.0)


@jax.jit
def model_forward(x_nchw, w1, b1, w2, b2):
    """x_nchw: (N, 3, H, W) f32; PyTorch-layout weights
    w1: (6, 3), b1: (6,), w2: (6, 6), b2: (6,)  ->  (N, 6, H+2, W+2) f32."""
    N, Cin, H, W = x_nchw.shape
    C2 = w2.shape[0]
    Hp, Wp = H + 2, W + 2
    P = Hp * Wp

    # Fold conv2 o conv1 into an independent affine map of x (tiny host-side math).
    w12 = w2 @ w1                                # (C2, Cin)
    b12 = w2 @ b1 + b2                           # (C2,)
    wb = jnp.concatenate(
        [w1, w12, b1[:, None], b12[:, None]], axis=1).astype(jnp.float32)  # (C2, 2*Cin+2)

    # conv1's padding=1: zero-pad spatially.  This is the only wrapper-side pass
    # and it is input-sized; channels stay on the sublane-friendly axis so no
    # transposes are needed anywhere, and the output needs no slice/transpose.
    xp = jnp.pad(x_nchw, ((0, 0), (0, 0), (1, 1), (1, 1)))
    xf = xp.reshape(N, Cin, P)                   # contiguous reshape (free)

    tp = P if P <= _TP_MAX else _TP_MAX          # full pixel dim, or a multiple of 128
    n_pt = pl.cdiv(P, tp)                        # any OOB tail block is masked by Pallas

    out = pl.pallas_call(
        _fused_kernel,
        out_shape=jax.ShapeDtypeStruct((N, C2, P), jnp.float32),
        grid_spec=pltpu.PrefetchScalarGridSpec(
            num_scalar_prefetch=0,
            grid=(N, n_pt),
            in_specs=[
                pl.BlockSpec((None, Cin, tp), lambda n, t: (n, 0, t)),
                pl.BlockSpec((C2, 2 * Cin + 2), lambda n, t: (0, 0)),
            ],
            out_specs=pl.BlockSpec((None, C2, tp), lambda n, t: (n, 0, t)),
        ),
        compiler_params=pltpu.CompilerParams(
            dimension_semantics=("parallel", "parallel")),
    )(xf, wb)

    return out.reshape(N, C2, Hp, Wp)


def init_params(key):
    """Deterministic Conv2d-style init (kaiming-uniform-ish bounds), PyTorch layout."""
    k1, k2, k3, k4 = jax.random.split(key, 4)
    cin, c1, c2 = 3, 6, 6
    bound1 = 1.0 / jnp.sqrt(cin * 1 * 1)
    bound2 = 1.0 / jnp.sqrt(c1 * 1 * 1)
    w1 = jax.random.uniform(k1, (c1, cin), jnp.float32, -bound1, bound1)   # (Cout, Cin)
    b1 = jax.random.uniform(k2, (c1,), jnp.float32, -bound1, bound1)
    w2 = jax.random.uniform(k3, (c2, c1), jnp.float32, -bound2, bound2)
    b2 = jax.random.uniform(k4, (c2,), jnp.float32, -bound2, bound2)
    return w1, b1, w2, b2


def _reference(x_nchw, w1, b1, w2, b2):
    """Pure-JAX reference with the same (center-aligned) semantics."""
    xp = jnp.pad(x_nchw, ((0, 0), (0, 0), (1, 1), (1, 1)))
    v1 = jnp.einsum("oc,nchw->nohw", w1, xp) + b1[None, :, None, None]
    v2 = jnp.einsum("oc,nchw->nohw", w2, v1) + b2[None, :, None, None]
    v3 = jnp.maximum(v1, v2)
    v4 = jnp.maximum(v2, v3)
    return jnp.maximum(v4, 0.0)


if __name__ == "__main__":
    key = jax.random.PRNGKey(0)
    kx, kp = jax.random.split(key)

    # small shapes consistent with the module: batch=2, C=3, spatial=16
    x = jax.random.normal(kx, (2, 3, 16, 16), dtype=jnp.float32)
    w1, b1, w2, b2 = init_params(kp)

    out = jax.block_until_ready(model_forward(x, w1, b1, w2, b2))
    ref = _reference(x, w1, b1, w2, b2)

    assert out.shape == (2, 6, 18, 18), out.shape
    assert jnp.allclose(out, ref, atol=1e-5, rtol=1e-5), "mismatch vs reference"

    print("KERNEL_OK")
</pallas_src>

<mosaic_0001>
module attributes {stable_mosaic.version = 11 : i64} {
  func.func @_fused_kernel(%arg0: i32, %arg1: i32, %arg2: memref<1x3x324xf32, #tpu.memory_space<vmem>>, %arg3: memref<6x8xf32, #tpu.memory_space<vmem>>, %arg4: memref<1x6x324xf32, #tpu.memory_space<vmem>>) attributes {dimension_semantics = [#tpu.dimension_semantics<parallel>, #tpu.dimension_semantics<parallel>], iteration_bounds = array<i64: 2, 1>, scalar_prefetch = 0 : i64, scratch_operands = 0 : i64, tpu.core_type = #tpu.core_type<tc>, window_params = [{transform_indices = @transform_0, window_bounds = array<i64: 1, 3, 324>}, {pipeline_mode = #tpu.pipeline_mode<synchronous>, transform_indices = @transform_1, window_bounds = array<i64: 6, 8>}, {transform_indices = @transform_2, window_bounds = array<i64: 1, 6, 324>}]} {
    %c0 = arith.constant 0 : index
    %c6 = arith.constant 6 : index
    %0 = vector.load %arg3[%c0, %c6] : memref<6x8xf32, #tpu.memory_space<vmem>>, vector<6x1xf32>
    %c0_0 = arith.constant 0 : index
    %c7 = arith.constant 7 : index
    %1 = vector.load %arg3[%c0_0, %c7] : memref<6x8xf32, #tpu.memory_space<vmem>>, vector<6x1xf32>
    %c0_1 = arith.constant 0 : index
    %c0_2 = arith.constant 0 : index
    %c0_3 = arith.constant 0 : index
    %2 = vector.load %arg2[%c0_1, %c0_2, %c0_3] : memref<1x3x324xf32, #tpu.memory_space<vmem>>, vector<1x1x324xf32>
    %3 = vector.shape_cast %2 : vector<1x1x324xf32> to vector<1x324xf32>
    %c0_4 = arith.constant 0 : index
    %c0_5 = arith.constant 0 : index
    %4 = vector.load %arg3[%c0_4, %c0_5] : memref<6x8xf32, #tpu.memory_space<vmem>>, vector<6x1xf32>
    %5 = vector.broadcast %4 : vector<6x1xf32> to vector<6x324xf32>
    %6 = vector.broadcast %3 : vector<1x324xf32> to vector<6x324xf32>
    %7 = arith.mulf %5, %6 : vector<6x324xf32>
    %8 = vector.broadcast %0 : vector<6x1xf32> to vector<6x324xf32>
    %9 = arith.addf %8, %7 : vector<6x324xf32>
    %c0_6 = arith.constant 0 : index
    %c3 = arith.constant 3 : index
    %10 = vector.load %arg3[%c0_6, %c3] : memref<6x8xf32, #tpu.memory_space<vmem>>, vector<6x1xf32>
    %11 = vector.broadcast %10 : vector<6x1xf32> to vector<6x324xf32>
    %12 = vector.broadcast %3 : vector<1x324xf32> to vector<6x324xf32>
    %13 = arith.mulf %11, %12 : vector<6x324xf32>
    %14 = vector.broadcast %1 : vector<6x1xf32> to vector<6x324xf32>
    %15 = arith.addf %14, %13 : vector<6x324xf32>
    %c0_7 = arith.constant 0 : index
    %c1 = arith.constant 1 : index
    %c0_8 = arith.constant 0 : index
    %16 = vector.load %arg2[%c0_7, %c1, %c0_8] : memref<1x3x324xf32, #tpu.memory_space<vmem>>, vector<1x1x324xf32>
    %17 = vector.shape_cast %16 : vector<1x1x324xf32> to vector<1x324xf32>
    %c0_9 = arith.constant 0 : index
    %c1_10 = arith.constant 1 : index
    %18 = vector.load %arg3[%c0_9, %c1_10] : memref<6x8xf32, #tpu.memory_space<vmem>>, vector<6x1xf32>
    %19 = vector.broadcast %18 : vector<6x1xf32> to vector<6x324xf32>
    %20 = vector.broadcast %17 : vector<1x324xf32> to vector<6x324xf32>
    %21 = arith.mulf %19, %20 : vector<6x324xf32>
    %22 = arith.addf %9, %21 : vector<6x324xf32>
    %c0_11 = arith.constant 0 : index
    %c4 = arith.constant 4 : index
    %23 = vector.load %arg3[%c0_11, %c4] : memref<6x8xf32, #tpu.memory_space<vmem>>, vector<6x1xf32>
    %24 = vector.broadcast %23 : vector<6x1xf32> to vector<6x324xf32>
    %25 = vector.broadcast %17 : vector<1x324xf32> to vector<6x324xf32>
    %26 = arith.mulf %24, %25 : vector<6x324xf32>
    %27 = arith.addf %15, %26 : vector<6x324xf32>
    %c0_12 = arith.constant 0 : index
    %c2 = arith.constant 2 : index
    %c0_13 = arith.constant 0 : index
    %28 = vector.load %arg2[%c0_12, %c2, %c0_13] : memref<1x3x324xf32, #tpu.memory_space<vmem>>, vector<1x1x324xf32>
    %29 = vector.shape_cast %28 : vector<1x1x324xf32> to vector<1x324xf32>
    %c0_14 = arith.constant 0 : index
    %c2_15 = arith.constant 2 : index
    %30 = vector.load %arg3[%c0_14, %c2_15] : memref<6x8xf32, #tpu.memory_space<vmem>>, vector<6x1xf32>
    %31 = vector.broadcast %30 : vector<6x1xf32> to vector<6x324xf32>
    %32 = vector.broadcast %29 : vector<1x324xf32> to vector<6x324xf32>
    %33 = arith.mulf %31, %32 : vector<6x324xf32>
    %34 = arith.addf %22, %33 : vector<6x324xf32>
    %c0_16 = arith.constant 0 : index
    %c5 = arith.constant 5 : index
    %35 = vector.load %arg3[%c0_16, %c5] : memref<6x8xf32, #tpu.memory_space<vmem>>, vector<6x1xf32>
    %36 = vector.broadcast %35 : vector<6x1xf32> to vector<6x324xf32>
    %37 = vector.broadcast %29 : vector<1x324xf32> to vector<6x324xf32>
    %38 = arith.mulf %36, %37 : vector<6x324xf32>
    %39 = arith.addf %27, %38 : vector<6x324xf32>
    %40 = arith.maximumf %34, %39 : vector<6x324xf32>
    %cst = arith.constant 0.000000e+00 : f32
    %41 = vector.broadcast %cst : f32 to vector<6x324xf32>
    %42 = arith.maximumf %40, %41 : vector<6x324xf32>
    %c0_17 = arith.constant 0 : index
    %c0_18 = arith.constant 0 : index
    %c0_19 = arith.constant 0 : index
    %43 = vector.load %arg4[%c0_17, %c0_18, %c0_19] : memref<1x6x324xf32, #tpu.memory_space<vmem>>, vector<1x6x324xf32>
    %44 = vector.shape_cast %43 : vector<1x6x324xf32> to vector<6x324xf32>
    %45 = vector.shape_cast %42 : vector<6x324xf32> to vector<1x6x324xf32>
    tpu.vector_store %arg4[%c0_17, %c0_18, %c0_19], %45 {strides = array<i32>} : memref<1x6x324xf32, #tpu.memory_space<vmem>>, vector<1x6x324xf32>,
    return
  }
  func.func @transform_0(%arg0: i32, %arg1: i32) -> (i32, i32, i32) {
    %c0_i32 = arith.constant 0 : i32
    %c0_i32_0 = arith.constant 0 : i32
    return %arg0, %c0_i32, %arg1 : i32, i32, i32
  }
  func.func @transform_1(%arg0: i32, %arg1: i32) -> (i32, i32) {
    %c0_i32 = arith.constant 0 : i32
    %c0_i32_0 = arith.constant 0 : i32
    %c0_i32_1 = arith.constant 0 : i32
    return %c0_i32, %c0_i32_0 : i32, i32
  }
  func.func @transform_2(%arg0: i32, %arg1: i32) -> (i32, i32, i32) {
    %c0_i32 = arith.constant 0 : i32
    %c0_i32_0 = arith.constant 0 : i32
    return %arg0, %c0_i32, %arg1 : i32, i32, i32
  }
}

</mosaic_0001>

<bundles_post_ra>
// kernel: model_forward.1
= control target key start
LH: loop header
LB: loop body
LE: loop exit
PB: predicated region body
PF: predicated region fallthrough
CT: control target
= control target key end

     0   :  { %s504_s9 = smov 0   ;;  %s506_s10 = smov 0   ;;  %s548_s0 = inlined_call_operand.vmem [shape: f32[2,3,324], index: 0, kind: input, shape index: {}]   ;;  %s549_s1 = inlined_call_operand.vmem [shape: f32[6,8], index: 1, kind: input, shape index: {}]   ;;  %s550_s2 = inlined_call_operand.vmem [shape: f32[2,6,324], index: 2, kind: output, shape index: {}]  }
   0x1   :  { %s508_s11 = smov 0  }
   0x2 LB: > { %s24_s12 = sadd.s32 1, %s475_s10  ;;  %p407_p0 = scmp.ge.s32.totalorder %s479_s11, 1  ;;  %s479_s11 = sphi %s508_s11, %s12_s11   ;;  %s475_s10 = sphi %s506_s10, %s552_s10   ;;  %s471_s9 = sphi %s504_s9, %s551_s9  }
   0x3   : > { %p26_p1 = scmp.ge.s32.totalorder %s24_s12, 2  ;;  %p133_p2 = scmp.lt.s32.totalorder %s479_s11, 3 }
   0x5   : > { %s554_s12 = smov (%p26_p1, %s24_s12), 0  ;;  %p134_p3 = pnand %p407_p0, %p133_p2 }
   0x6   : > { %v183_v0 = vld [vmem:[%s549_s1] sm:$0x3f] (!%p134_p3)  ;;  %v481_v1 = vmov (!%p134_p3), 6   ;;  %v482_v2 = vmov (!%p134_p3), 0   ;;  %v483_v3 = vmov (!%p134_p3), 7   ;;  %v484_v4 = vmov (!%p134_p3), 3  }
   0x7   : > { %137 = sbr.rel (%p134_p3) target bundleno = 166 (0xa6), region = 28  ;;  %450 = vset.pattern.permute.xlu1 (!%p134_p3), %v481_v1  ;;  %448 = vset.pattern.permute.xlu0 (!%p134_p3), %v482_v2  ;;  %v485_v5 = vmov (!%p134_p3), 1   ;;  %v486_v6 = vmov (!%p134_p3), 4   ;;  %v487_v7 = vmov (!%p134_p3), 2   ;;  %v488_v8 = vmov (!%p134_p3), 5   ;;  %p164_p4 = scmp.lt.s32.totalorder (!%p134_p3), %s471_s9, 1 }
   0x8   : > { %210 = vperm.xlu1 (!%p134_p3), %450, %v183_v0   ;;  %187 = vperm.xlu0 (!%p134_p3), %448, %v183_v0   ;;  %v191_v9 = vlaneseq (!%p134_p3)  ;;  %vm314_vm0 = vcmask (!%p134_p3), 553984  }
   0xa   : > { %v192_v11 = vshrl.u32 (!%p134_p3), %v191_v9, 7 }
   0xc   : > { %451 = vset.pattern.permute.xlu1 (!%p134_p3), %v483_v3  ;;  %449 = vset.pattern.permute.xlu0 (!%p134_p3), %v484_v4  ;;  %v193_v13 = vsub.s32 (!%p134_p3), 0, %v192_v11  ;;  %v197_v14 = vsub.s32 (!%p134_p3), 1, %v192_v11  ;;  %v201_v15 = vsub.s32 (!%p134_p3), 2, %v192_v11 }
   0xd   : > { %224 = vperm.xlu1 (!%p134_p3), %451, %v183_v0   ;;  %217 = vperm.xlu0 (!%p134_p3), %449, %v183_v0  }
   0xe   : > { %s556_s9 = smov (!%p164_p4, %s471_s9), 1 }
   0xf   : > { %s414_s15 = smul.u32 12, %s556_s9 }
  0x10   : > { %s415_s19 = smul.u32 24, %s556_s9 }
  0x11   : > { %452 = vset.pattern.permute.xlu1 %v485_v5  ;;  %453 = vset.pattern.permute.xlu0 %v486_v6  ;;  %s171_s18 = scalar_lea.vmem %s548_s0, %s414_s15 }
  0x12   : > { %233 = vperm.xlu1 %452, %v183_v0   ;;  %259 = vperm.xlu0 %453, %v183_v0   ;;  %v184_v17 = vld [vmem:[%s171_s18] ss:$4 sm:$0x7]  ;;  %v410_v19 = vld [vmem:[%s171_s18 + $0x1] ss:$4 sm:$0x7]  ;;  %s181_s22 = scalar_lea.vmem %s550_s2, %s415_s19 }
  0x13   : > { %v194_v20 = vrot.slane %v184_v17, %v193_v13  ;;  %v198_v21 = vrot.slane %v184_v17, %v197_v14  ;;  %v202_v22 = vrot.slane %v184_v17, %v201_v15  ;;  %v240_v24 = vrot.slane %v410_v19, %v193_v13  ;;  %v411_v25 = vld [vmem:[%s171_s18 + $0x2] ss:$4 sm:$0x7] }
  0x14   : > { %v244_v26 = vrot.slane %v410_v19, %v197_v14  ;;  %v248_v27 = vrot.slane %v410_v19, %v201_v15  ;;  %v278_v34 = vrot.slane %v411_v25, %v193_v13  ;;  %v282_v35 = vrot.slane %v411_v25, %v197_v14 }
  0x15   : > { %v286_v39 = vrot.slane %v411_v25, %v201_v15 }
  0x16   : > { %454 = vset.pattern.permute.xlu1 %v487_v7  ;;  %456 = vset.pattern.permute.xlu0 %v488_v8 }
  0x17   : > { %271 = vperm.xlu1 %454, %v183_v0  }
  0x1b   : > { %455 = vset.pattern.permute.xlu1 %v488_v8 }
  0x1c   : > { %297 = vperm.xlu1 %455, %v183_v0  }
  0x87   : > { %v211_v10 = vpop.permute.xlu1 %210  ;;  %v188_v12 = vpop.permute.xlu0 %187 }
  0x88   : > { %v206_v28 = vmul.f32 %v194_v20, %v188_v12  ;;  %v207_v29 = vmul.f32 %v198_v21, %v188_v12  ;;  %v208_v30 = vmul.f32 %v202_v22, %v188_v12 }
  0x8a   : > { %v213_v44 = vadd.f32 %v211_v10, %v206_v28  ;;  %v214_v45 = vadd.f32 %v211_v10, %v207_v29  ;;  %v215_v46 = vadd.f32 %v211_v10, %v208_v30 }
  0x8c   : > { %v225_v16 = vpop.permute.xlu1 %224  ;;  %v218_v18 = vpop.permute.xlu0 %217 }
  0x8d   : > { %v220_v32 = vmul.f32 %v218_v18, %v194_v20  ;;  %v221_v33 = vmul.f32 %v218_v18, %v198_v21  ;;  %v222_v36 = vmul.f32 %v218_v18, %v202_v22 }
  0x8f   : > { %v227_v48 = vadd.f32 %v225_v16, %v220_v32  ;;  %v228_v49 = vadd.f32 %v225_v16, %v221_v33  ;;  %v229_v52 = vadd.f32 %v225_v16, %v222_v36 }
  0x91   : > { %v234_v23 = vpop.permute.xlu1 %233  ;;  %v260_v31 = vpop.permute.xlu0 %259 }
  0x92   : > { %v252_v37 = vmul.f32 %v240_v24, %v234_v23  ;;  %v253_v40 = vmul.f32 %v244_v26, %v234_v23  ;;  %v254_v41 = vmul.f32 %v248_v27, %v234_v23  ;;  %v262_v42 = vmul.f32 %v260_v31, %v240_v24 }
  0x93   : > { %v263_v43 = vmul.f32 %v260_v31, %v244_v26  ;;  %v264_v47 = vmul.f32 %v260_v31, %v248_v27 }
  0x94   : > { %v255_v53 = vadd.f32 %v252_v37, %v213_v44  ;;  %v256_v55 = vadd.f32 %v253_v40, %v214_v45  ;;  %v257_v56 = vadd.f32 %v254_v41, %v215_v46  ;;  %v265_v57 = vadd.f32 %v262_v42, %v227_v48 }
  0x95   : > { %v266_v58 = vadd.f32 %v263_v43, %v228_v49  ;;  %v267_v60 = vadd.f32 %v264_v47, %v229_v52 }
  0x96   : > { %v272_v38 = vpop.permute.xlu1 %271 }
  0x97   : > { %v290_v50 = vmul.f32 %v278_v34, %v272_v38  ;;  %v291_v51 = vmul.f32 %v282_v35, %v272_v38  ;;  %v292_v54 = vmul.f32 %v286_v39, %v272_v38 }
  0x99   : > { %v293_v0 = vadd.f32 %v290_v50, %v255_v53  ;;  %v294_v1 = vadd.f32 %v291_v51, %v256_v55  ;;  %v295_v2 = vadd.f32 %v292_v54, %v257_v56 }
  0x9b   : > { %v298_v59 = vpop.permute.xlu1 %297 }
  0x9c   : > { %v300_v61 = vmul.f32 %v298_v59, %v278_v34  ;;  %v301_v62 = vmul.f32 %v298_v59, %v282_v35  ;;  %v302_v63 = vmul.f32 %v298_v59, %v286_v39 }
  0x9e   : > { %v303_v3 = vadd.f32 %v300_v61, %v265_v57  ;;  %v304_v4 = vadd.f32 %v301_v62, %v266_v58  ;;  %v305_v5 = vadd.f32 %v302_v63, %v267_v60 }
  0xa0   : > { %v306_v6 = vmax.f32 %v293_v0, %v303_v3  ;;  %v307_v7 = vmax.f32 %v294_v1, %v304_v4  ;;  %v308_v8 = vmax.f32 %v295_v2, %v305_v5 }
  0xa2   : > { %v309_v9 = vmax.f32 %v306_v6, 0.0  ;;  %v310_v10 = vmax.f32 %v307_v7, 0.0  ;;  %v311_v11 = vmax.f32 %v308_v8, 0.0 }
  0xa4   : > { %312 = vst [vmem:[%s181_s22] sm:$0x3f] %v309_v9  ;;  %313 = vst [vmem:[%s181_s22 + $0x8] sm:$0x3f] %v310_v10 }
  0xa5   : > { %315 = vst.msk [vmem:[%s181_s22 + $0x10] sm:$0x3f] %vm314_vm0, %v311_v11 }
  0xa6 PF: > { %s12_s11 = sadd.s32 1, %s479_s11   ;;  %s551_s9 = smov %s475_s10 }
  0xa7   : > { %p9_p5 = scmp.ge.s32.totalorder %s12_s11, 4   ;;  %s552_s10 = smov %s554_s12 }
  0xa9   :  { %11 = sbr.rel (!%p9_p5) target bundleno = 2 (0x2), region = 60 }

</bundles_post_ra>
